<compile_context>
chip_gen: v5e
topology: v5e:2x2
jax: 0.10.0
libtpu: 0.0.40
codegen_flags: <defaults>
</compile_context>

<pallas_src>
import jax
import jax.numpy as jnp
from jax.experimental import pallas as pl
from jax.experimental.pallas import tpu as pltpu


def cnf_kernel(x_ref, w1a_ref, b1_ref, waug_ref, baug_ref, out_ref):
    x = x_ref[...]                       # (TB, 1+D)   full input tile (col 0 is ignored
                                         #              via the zero row in W1aug)
    w1a = w1a_ref[...]                   # (1+D, H)    [0 ; W1^T]
    b1 = b1_ref[...]                     # (1, H)
    waug = waug_ref[...]                 # (2H, 1+D)   [[0, W2^T], [c, 0]]
    baug = baug_ref[...]                 # (1, 1+D)    [-sum(c), b2]

    # Linear -> tanh (MXU + EUP)
    h = jnp.dot(x, w1a, preferred_element_type=jnp.float32) + b1          # (TB, H)
    t = jnp.tanh(h)                                                       # (TB, H)

    # Augmented second matmul produces [-trJ, x_out] in one pass:
    #   col 0  : sum_k t_k^2 * c_k - sum_k c_k = -sum_k (1 - t_k^2) c_k = -trJ
    #   col 1..: t @ W2^T + b2                 = x_out
    lhs = jnp.concatenate([t, t * t], axis=-1)                            # (TB, 2H)
    out = jnp.dot(lhs, waug, preferred_element_type=jnp.float32) + baug   # (TB, 1+D)

    out_ref[...] = out.astype(out_ref.dtype)                              # single store


def cnf_forward(x, w1, b1, w2, b2, *, tb=4096):
    """CNF forward.  x: (B, 1+D) f32.  Returns (B, 1+D): [-trJ, net(x[:, 1:])].

    Note: the torch `+ 0*x` term is dropped (differs only for NaN/Inf inputs).
    """
    B, Dp1 = x.shape
    D = Dp1 - 1
    H = w1.shape[0]

    f32 = jnp.float32
    # ---- call-invariant weight preprocessing (done once, outside the kernel) ----
    # W1 augmented: leading zero row so the log-prob column of x is ignored.
    w1aug = jnp.concatenate([jnp.zeros((1, H), f32), w1.T.astype(f32)], axis=0)   # (1+D, H)
    b1_2d = b1.reshape(1, H).astype(f32)

    # c = diag(W1 @ W2):  c[k] = sum_i W1[k, i] * W2[i, k]
    c = jnp.sum(w1.astype(f32) * w2.T.astype(f32), axis=1)                        # (H,)
    w2t = w2.T.astype(f32)                                                        # (H, D)
    top = jnp.concatenate([jnp.zeros((H, 1), f32), w2t], axis=1)                  # (H, 1+D)
    bot = jnp.concatenate([c.reshape(H, 1), jnp.zeros((H, D), f32)], axis=1)      # (H, 1+D)
    waug = jnp.concatenate([top, bot], axis=0)                                    # (2H, 1+D)
    baug = jnp.concatenate([(-jnp.sum(c)).reshape(1), b2.astype(f32)]).reshape(1, Dp1)

    # ---- batch tiling: full batch if small, else large tiles (multiple of 8) ----
    TB = B if B <= tb else tb
    grid = (pl.cdiv(B, TB),)

    grid_spec = pltpu.PrefetchScalarGridSpec(
        num_scalar_prefetch=0,
        grid=grid,
        in_specs=[
            pl.BlockSpec((TB, Dp1), lambda i: (i, 0)),      # x        : batch-blocked
            pl.BlockSpec((Dp1, H), lambda i: (0, 0)),       # [0; W1^T]: resident
            pl.BlockSpec((1, H), lambda i: (0, 0)),         # b1
            pl.BlockSpec((2 * H, Dp1), lambda i: (0, 0)),   # Waug     : resident
            pl.BlockSpec((1, Dp1), lambda i: (0, 0)),       # b_aug
        ],
        out_specs=pl.BlockSpec((TB, Dp1), lambda i: (i, 0)),
    )
    return pl.pallas_call(
        cnf_kernel,
        out_shape=jax.ShapeDtypeStruct((B, Dp1), x.dtype),
        grid_spec=grid_spec,
        compiler_params=pltpu.CompilerParams(
            dimension_semantics=("parallel",)),   # v7x: shard batch tiles across TCs
    )(x, w1aug, b1_2d, waug, baug)


# ---------------- reference (pure JAX, mirrors torch autograd_trace) ----------------

def _net_ref(x_in, w1, b1, w2, b2):
    return jnp.tanh(x_in @ w1.T + b1) @ w2.T + b2


def _reference(x, w1, b1, w2, b2):
    x_in = x[:, 1:]
    x_out = _net_ref(x_in, w1, b1, w2, b2)
    jac_fn = jax.vmap(jax.jacfwd(lambda xi: _net_ref(xi[None], w1, b1, w2, b2)[0]))
    J = jac_fn(x_in)                                  # (B, D, D)
    trJ = jnp.trace(J, axis1=-2, axis2=-1)            # (B,)
    return jnp.concatenate([-trJ[:, None], x_out], axis=1) + 0.0 * x


if __name__ == "__main__":
    D, H = 15, 32          # x has 1 + D = 16 features
    key = jax.random.PRNGKey(0)
    kx, k1, k2, k3, k4 = jax.random.split(key, 5)

    w1 = 0.3 * jax.random.normal(k1, (H, D), dtype=jnp.float32)
    b1 = 0.1 * jax.random.normal(k2, (H,), dtype=jnp.float32)
    w2 = 0.3 * jax.random.normal(k3, (D, H), dtype=jnp.float32)
    b2 = 0.1 * jax.random.normal(k4, (D,), dtype=jnp.float32)

    # small single-tile case
    B = 8
    x = jax.random.normal(kx, (B, 1 + D), dtype=jnp.float32)
    out = jax.block_until_ready(cnf_forward(x, w1, b1, w2, b2))
    ref = _reference(x, w1, b1, w2, b2)
    assert out.shape == (B, 1 + D)
    assert jnp.allclose(out, ref, atol=1e-4, rtol=1e-4), (
        f"max err {jnp.max(jnp.abs(out - ref))}")

    # multi-tile case (exercises grid > 1 / "parallel" batch axis)
    B2 = 64
    x2 = jax.random.normal(kx, (B2, 1 + D), dtype=jnp.float32)
    out2 = jax.block_until_ready(cnf_forward(x2, w1, b1, w2, b2, tb=32))
    ref2 = _reference(x2, w1, b1, w2, b2)
    assert jnp.allclose(out2, ref2, atol=1e-4, rtol=1e-4), (
        f"max err {jnp.max(jnp.abs(out2 - ref2))}")

    print("KERNEL_OK")
</pallas_src>

<mosaic_0001>
module attributes {stable_mosaic.version = 11 : i64} {
  func.func @cnf_kernel(%arg0: i32, %arg1: memref<8x16xf32, #tpu.memory_space<vmem>>, %arg2: memref<16x32xf32, #tpu.memory_space<vmem>>, %arg3: memref<1x32xf32, #tpu.memory_space<vmem>>, %arg4: memref<64x16xf32, #tpu.memory_space<vmem>>, %arg5: memref<1x16xf32, #tpu.memory_space<vmem>>, %arg6: memref<8x16xf32, #tpu.memory_space<vmem>>) attributes {dimension_semantics = [#tpu.dimension_semantics<parallel>], iteration_bounds = array<i64: 1>, scalar_prefetch = 0 : i64, scratch_operands = 0 : i64, tpu.core_type = #tpu.core_type<tc>, window_params = [{transform_indices = @transform_0, window_bounds = array<i64: 8, 16>}, {pipeline_mode = #tpu.pipeline_mode<synchronous>, transform_indices = @transform_1, window_bounds = array<i64: 16, 32>}, {pipeline_mode = #tpu.pipeline_mode<synchronous>, transform_indices = @transform_2, window_bounds = array<i64: 1, 32>}, {pipeline_mode = #tpu.pipeline_mode<synchronous>, transform_indices = @transform_3, window_bounds = array<i64: 64, 16>}, {pipeline_mode = #tpu.pipeline_mode<synchronous>, transform_indices = @transform_4, window_bounds = array<i64: 1, 16>}, {transform_indices = @transform_5, window_bounds = array<i64: 8, 16>}]} {
    %c0 = arith.constant 0 : index
    %c0_0 = arith.constant 0 : index
    %0 = vector.load %arg1[%c0, %c0_0] : memref<8x16xf32, #tpu.memory_space<vmem>>, vector<8x16xf32>
    %c0_1 = arith.constant 0 : index
    %c0_2 = arith.constant 0 : index
    %1 = vector.load %arg2[%c0_1, %c0_2] : memref<16x32xf32, #tpu.memory_space<vmem>>, vector<16x32xf32>
    %c0_3 = arith.constant 0 : index
    %c0_4 = arith.constant 0 : index
    %2 = vector.load %arg3[%c0_3, %c0_4] : memref<1x32xf32, #tpu.memory_space<vmem>>, vector<1x32xf32>
    %c0_5 = arith.constant 0 : index
    %c0_6 = arith.constant 0 : index
    %3 = vector.load %arg4[%c0_5, %c0_6] : memref<64x16xf32, #tpu.memory_space<vmem>>, vector<64x16xf32>
    %c0_7 = arith.constant 0 : index
    %c0_8 = arith.constant 0 : index
    %4 = vector.load %arg5[%c0_7, %c0_8] : memref<1x16xf32, #tpu.memory_space<vmem>>, vector<1x16xf32>
    %cst = arith.constant dense<0.000000e+00> : vector<8x32xf32>
    %5 = tpu.matmul %0, %1, %cst {dimension_numbers = #tpu.dot_dimension_numbers<[1], [0], [0], [1], [0, 0, 1, 1], [], []>} : vector<8x16xf32>, vector<16x32xf32>, vector<8x32xf32> -> vector<8x32xf32>
    %6 = vector.broadcast %2 : vector<1x32xf32> to vector<8x32xf32>
    %7 = arith.addf %5, %6 : vector<8x32xf32>
    %8 = math.tanh %7 : vector<8x32xf32>
    %9 = arith.mulf %8, %8 : vector<8x32xf32>
    %10 = tpu.concatenate %8, %9 in 1 : vector<8x32xf32>, vector<8x32xf32> -> vector<8x64xf32>
    %cst_9 = arith.constant dense<0.000000e+00> : vector<8x16xf32>
    %11 = tpu.matmul %10, %3, %cst_9 {dimension_numbers = #tpu.dot_dimension_numbers<[1], [0], [0], [1], [0, 0, 1, 1], [], []>} : vector<8x64xf32>, vector<64x16xf32>, vector<8x16xf32> -> vector<8x16xf32>
    %12 = vector.broadcast %4 : vector<1x16xf32> to vector<8x16xf32>
    %13 = arith.addf %11, %12 : vector<8x16xf32>
    %c0_10 = arith.constant 0 : index
    %c0_11 = arith.constant 0 : index
    %14 = vector.load %arg6[%c0_10, %c0_11] : memref<8x16xf32, #tpu.memory_space<vmem>>, vector<8x16xf32>
    tpu.vector_store %arg6[%c0_10, %c0_11], %13 {strides = array<i32>} : memref<8x16xf32, #tpu.memory_space<vmem>>, vector<8x16xf32>,
    return
  }
  func.func @transform_0(%arg0: i32) -> (i32, i32) {
    %c0_i32 = arith.constant 0 : i32
    %c0_i32_0 = arith.constant 0 : i32
    return %arg0, %c0_i32 : i32, i32
  }
  func.func @transform_1(%arg0: i32) -> (i32, i32) {
    %c0_i32 = arith.constant 0 : i32
    %c0_i32_0 = arith.constant 0 : i32
    %c0_i32_1 = arith.constant 0 : i32
    return %c0_i32, %c0_i32_0 : i32, i32
  }
  func.func @transform_2(%arg0: i32) -> (i32, i32) {
    %c0_i32 = arith.constant 0 : i32
    %c0_i32_0 = arith.constant 0 : i32
    %c0_i32_1 = arith.constant 0 : i32
    return %c0_i32, %c0_i32_0 : i32, i32
  }
  func.func @transform_3(%arg0: i32) -> (i32, i32) {
    %c0_i32 = arith.constant 0 : i32
    %c0_i32_0 = arith.constant 0 : i32
    %c0_i32_1 = arith.constant 0 : i32
    return %c0_i32, %c0_i32_0 : i32, i32
  }
  func.func @transform_4(%arg0: i32) -> (i32, i32) {
    %c0_i32 = arith.constant 0 : i32
    %c0_i32_0 = arith.constant 0 : i32
    %c0_i32_1 = arith.constant 0 : i32
    return %c0_i32, %c0_i32_0 : i32, i32
  }
  func.func @transform_5(%arg0: i32) -> (i32, i32) {
    %c0_i32 = arith.constant 0 : i32
    %c0_i32_0 = arith.constant 0 : i32
    return %arg0, %c0_i32 : i32, i32
  }
}

</mosaic_0001>

<bundles_post_ra>
// kernel: tpu_custom_call.1
= control target key start
LH: loop header
LB: loop body
LE: loop exit
PB: predicated region body
PF: predicated region fallthrough
CT: control target
= control target key end

     0   :  { %vm37_vm0 = vcmask 130048   ;;  %s223_s0 = inlined_call_operand.vmem [shape: f32[8,16], index: 0, kind: input, shape index: {}]   ;;  %s224_s1 = inlined_call_operand.vmem [shape: f32[16,32], index: 1, kind: input, shape index: {}]   ;;  %s225_s2 = inlined_call_operand.vmem [shape: f32[1,32], index: 2, kind: input, shape index: {}]   ;;  %s226_s3 = inlined_call_operand.vmem [shape: f32[64,16], index: 3, kind: input, shape index: {}]   ;;  %s227_s4 = inlined_call_operand.vmem [shape: f32[1,16], index: 4, kind: input, shape index: {}]   ;;  %s228_s5 = inlined_call_operand.hbm [shape: f32[8,16], index: 5, kind: output, shape index: {}]  }
   0x1   :  { %v23_v0 = vld [vmem:[%s224_s1 + $0x8] sm:$0xff]  ;;  %v22_v1 = vld [vmem:[%s224_s1] sm:$0xff] }
   0x2   :  { %55 = vmatpush.msra.mxu0 %v23_v0  ;;  %v21_v2 = vld [vmem:[%s223_s0] sm:$0xff] }
   0x3   :  { %10 = vsyncpa [#allocation3], 0  ;;  %v32_v3 = vld [vmem:[%s226_s3 + $0x38] sm:$0xff]  ;;  %v31_v4 = vld [vmem:[%s226_s3 + $0x30] sm:$0xff]  ;;  %s147_s13 = smov 32   ;;  %vm67_vm1 = vcmask 261120  }
   0x4   :  { %56 = vmatpush.msra.mxu0 %v22_v1  ;;  %84 = vmatpush.msra.mxu1 %v32_v3  ;;  %v30_v5 = vld [vmem:[%s226_s3 + $0x28] sm:$0xff]  ;;  %v29_v6 = vld [vmem:[%s226_s3 + $0x20] sm:$0xff]  ;;  %v28_v7 = vld [vmem:[%s226_s3 + $0x18] sm:$0xff]  ;;  %vm72_vm2 = vcmask 523264   ;;  %s104_s21 = sshll.u32 %s228_s5, 4  ;;  %s105_s21 = int_to_ptr.hbm [resolvable:$true] %s104_s21 }
   0x5   :  { %113 = vmatmul.msk.f32.vlgmr.msra.gmra.mxu0 %vm37_vm0, %v21_v2  ;;  %v27_v8 = vld [vmem:[%s226_s3 + $0x10] sm:$0xff]  ;;  %v26_v9 = vld [vmem:[%s226_s3 + $0x8] sm:$0xff]  ;;  %v117_v10 = vld [vmem:[%s225_s2] ss:$0 sm:$0xff]  ;;  %s148_s2 = smov [#allocation2]  }
   0x6   :  { %85 = vmatpush.msra.mxu1 %v31_v4  ;;  %v25_v15 = vld [vmem:[%s226_s3] sm:$0xff]  ;;  %s102_s18 = sshll.u32 %s148_s2, 4  ;;  %s103_s18 = int_to_ptr.vmem [resolvable:$true] %s102_s18 }
   0x7   :  { %v118_v18 = vld [vmem:[%s227_s4] ss:$0 sm:$0xff] }
   0x8   :  { %86 = vmatpush.msra.mxu1 %v30_v5 }
   0xa   :  { %87 = vmatpush.msra.mxu1 %v29_v6 }
   0xc   :  { %88 = vmatpush.msra.mxu1 %v28_v7 }
   0xe   :  { %89 = vmatpush.msra.mxu1 %v27_v8 }
  0x10   :  { %90 = vmatpush.msra.mxu1 %v26_v9 }
  0x12   :  { %91 = vmatpush.msra.mxu1 %v25_v15 }
  0x82   :  { %v58_v11 = vpop.f32.mrf.mxu0 }
  0x83   :  { %v59_v12 = vadd.f32 %v117_v10, %v58_v11 }
  0x85   :  { %119 = vtanh.f32 %v59_v12 }
  0x8b   :  { %v120_v13 = vpop.eup %119 }
  0x8c   :  { %v62_v14 = vmul.f32 %v120_v13, %v120_v13 }
  0x8e   :  { %64 = vrot.lane.b32.xlu0 %v62_v14, %s147_s13 }
 0x100   :  { %v65_v16 = vpop.permute.xlu0 %64 }
 0x101   :  { %v68_v17 = vsel %vm67_vm1, %v120_v13, %v65_v16 }
 0x102   :  { %114 = vmatmul.msk.f32.vlgmr.msra.gmra.mxu1 %vm72_vm2, %v68_v17 }
 0x17f   :  { %v93_v19 = vpop.f32.mrf.mxu1 }
 0x180   :  { %v94_v20 = vadd.f32 %v118_v18, %v93_v19 }
 0x182   :  { %96 = vst.msk [vmem:[#allocation2] sm:$0xff] %vm37_vm0, %v94_v20 }
 0x183   :  { %107 = dma.vmem_to_hbm [thread:$0]  %s103_s18, 128, %s105_s21, [#allocation3]  }
 0x184   :  { %145 = dma.done.wait [#allocation3], 128  }
 0x185   :  { %146 = vsyncadd [#allocation3], 4294967168 }
 0x186   :  { %112 = vsyncpa [#allocation3], 1 }

</bundles_post_ra>
